<compile_context>
chip_gen: v7x
topology: tpu7x:2x2x1
jax: 0.10.0
libtpu: 0.0.40
codegen_flags: <defaults>
</compile_context>

<pallas_src>
import functools

import jax
import jax.numpy as jnp
import numpy as np
from jax import lax
from jax.experimental import pallas as pl
from jax.experimental.pallas import tpu as pltpu


# ---------------------------------------------------------------------------
# Sub-pixel tap tables for ConvTranspose2d(kernel=4, stride=2, padding=1).
# For output index o = 2*u + q (q = parity) the contributing kernel taps are
#   q = 0 (even): k = 1 reads input[u + 0],  k = 3 reads input[u - 1]
#   q = 1 (odd):  k = 0 reads input[u + 1],  k = 2 reads input[u + 0]
# ---------------------------------------------------------------------------
_PHASE_TAPS = {
    0: ((1, 0), (3, -1)),
    1: ((0, 1), (2, 0)),
}


def _deconv2_taps(r):
    """Taps for final output index 4*m + r against the four sub-pixel planes
    of the 32-resolution map: ((k, plane_parity, dm), ...)."""
    g, q = r >> 1, r & 1
    taps = []
    for k, d in _PHASE_TAPS[q]:
        v = g + d
        taps.append((k, v % 2, v // 2))      # python floor-div handles v = -1
    return tuple(taps)


# ---------------------------------------------------------------------------
# One-time weight preprocessing (hoisted out of the jitted forward).
# Layout convention for all kernel operands:
#   rows (sublanes) = image row index m
#   lanes           = (channel | sub-pixel phase, column) blocks of width W
# ---------------------------------------------------------------------------
def prepare_weights(params, W):
    assert len(params) == 2, "this fused kernel implements up_scale == 2"
    (w1c, b1c, wd1c, bd1c), (w2c, b2c, wd2c, bd2c) = params

    w1 = np.asarray(w1c, np.float32).reshape(w1c.shape[0], w1c.shape[1])  # (Cmid, Cin)
    b1 = np.asarray(b1c, np.float32)                                      # (Cmid,)
    wd1 = np.asarray(wd1c, np.float32)                                    # (Cmid, Cmid, 4, 4)  [in, out, kh, kw]
    bd1 = np.asarray(bd1c, np.float32)                                    # (Cmid,)
    w2 = np.asarray(w2c, np.float32).reshape(-1)                          # (Cmid,)
    b2 = float(np.asarray(b2c, np.float32).reshape(-1)[0])
    wd2 = np.asarray(wd2c, np.float32).reshape(4, 4)
    bd2 = float(np.asarray(bd2c, np.float32).reshape(-1)[0])

    cmid, cin = w1.shape

    # --- stage 1: 1x1 conv (Cin->Cmid):  X'(R, Cin*W) @ Wk1 -> (R, Cmid*W) ---
    wk1 = np.kron(w1.T, np.eye(W, dtype=np.float32))          # (Cin*W, Cmid*W)
    b1row = np.repeat(b1, W)[None, :].astype(np.float32)      # (1, Cmid*W)

    # --- fold conv2 (1x1, Cmid->1) into the deconv-1 taps (linear o linear) --
    vfold = np.einsum('e,cehw->chw', w2, wd1).astype(np.float32)   # (Cmid, 4, 4)
    b_fold = float(np.dot(w2, bd1) + b2)

    # --- stage 2: deconv1(k4,s2,p1) o conv2:  stk3(H1)(R,3*Cmid*W) @ W2 -> (R, 4W)
    #     output lane (2*ph + pw)*W + n  <->  pre-ReLU y32[2m+ph, 2n+pw]
    w2big = np.zeros((3 * cmid * W, 4 * W), np.float32)
    crange = np.arange(cmid)
    for ph in range(2):
        for pw in range(2):
            for kh, dh in _PHASE_TAPS[ph]:
                for kw, dw in _PHASE_TAPS[pw]:
                    for n in range(W):
                        nn = n + dw
                        if 0 <= nn < W:
                            rows = (dh + 1) * cmid * W + crange * W + nn
                            w2big[rows, (2 * ph + pw) * W + n] += vfold[:, kh, kw]

    # --- stage 3: deconv2(k4,s2,p1):  stk3(Y)(R, 3*4W) @ W3 -> (R, 16W)
    #     output lane 4W*r + 4*n + c  ==  row-major NCHW (1, 4H, 4W) slab
    w3 = np.zeros((3 * 4 * W, 16 * W), np.float32)
    for r in range(4):
        for c in range(4):
            for kh, ph, dm in _deconv2_taps(r):
                for kw, pw, dn in _deconv2_taps(c):
                    for n in range(W):
                        nn = n + dn
                        if 0 <= nn < W:
                            w3[(dm + 1) * 4 * W + (2 * ph + pw) * W + nn,
                               4 * W * r + 4 * n + c] += wd2[kh, kw]

    scal = np.array([b_fold, bd2], np.float32)                 # SMEM scalars
    return (jnp.asarray(wk1), jnp.asarray(b1row), jnp.asarray(w2big),
            jnp.asarray(w3), jnp.asarray(scal))


# ---------------------------------------------------------------------------
# Fused kernel body: three lane-dense MXU matmuls + 4 tiny sublane shifts.
# ---------------------------------------------------------------------------
def _up_conv_block_kernel(x_ref, wk1_ref, b1_ref, w2_ref, w3_ref, scal_ref,
                          o_ref, *, img_rows):
    f32 = jnp.float32
    R = x_ref.shape[0]                       # rows in this block (H or B*H)
    multi_image = R > img_rows

    if multi_image:
        rows = lax.broadcasted_iota(jnp.int32, (R, 1), 0)
        if (img_rows & (img_rows - 1)) == 0:
            rmod = jnp.bitwise_and(rows, img_rows - 1)
        else:
            rmod = rows % img_rows
        not_top = rmod != 0                  # row m-1 stays inside the image
        not_bot = rmod != (img_rows - 1)     # row m+1 stays inside the image

    def stk3(a):
        # (R, L) -> (R, 3L): lane-concat of the -1 / 0 / +1 row-shifted copies,
        # zero-padded at image boundaries.
        z = jnp.zeros((1, a.shape[1]), f32)
        up = jnp.concatenate([z, a[:-1, :]], axis=0)    # up[m] = a[m-1]
        dn = jnp.concatenate([a[1:, :], z], axis=0)     # dn[m] = a[m+1]
        if multi_image:                                 # no cross-image bleed
            up = jnp.where(not_top, up, 0.0)
            dn = jnp.where(not_bot, dn, 0.0)
        return jnp.concatenate([up, a, dn], axis=1)

    # stage 1: 1x1 conv (Cin -> Cmid) + ReLU
    h1 = jnp.dot(x_ref[...], wk1_ref[...], preferred_element_type=f32)
    h1 = jnp.maximum(h1 + b1_ref[...], 0.0)                      # (R, Cmid*W)

    # stage 2: ConvTranspose2d(Cmid,Cmid,4,s2,p1) o Conv2d(Cmid,1,1) + ReLU
    y = jnp.dot(stk3(h1), w2_ref[...], preferred_element_type=f32)
    y = jnp.maximum(y + scal_ref[0], 0.0)                        # (R, 4W)

    # stage 3: ConvTranspose2d(1,1,4,s2,p1) + bias, straight to the NCHW slab
    out = jnp.dot(stk3(y), w3_ref[...], preferred_element_type=f32) + scal_ref[1]
    o_ref[...] = out.astype(o_ref.dtype)


# ---------------------------------------------------------------------------
# Wrapper: NCHW in / NCHW out, one pallas_call.
# ---------------------------------------------------------------------------
@functools.lru_cache(maxsize=1)
def _has_multiple_tensorcores():
    try:
        return "v7" in jax.devices()[0].device_kind.lower()
    except Exception:
        return False


@functools.partial(jax.jit, static_argnums=(2,))
def _forward_jit(x_nchw, prep, rows_per_block):
    wk1, b1row, w2big, w3, scal = prep
    n, cin, h, w = x_nchw.shape
    total_rows = n * h
    grid = (total_rows // rows_per_block,)

    # Single small layout op outside the kernel: NCHW -> rows-in-sublanes,
    # (channel, column)-in-lanes.  Everything downstream is lane-dense.
    x_rows = jnp.transpose(x_nchw, (0, 2, 1, 3)).reshape(total_rows, cin * w)

    out = pl.pallas_call(
        functools.partial(_up_conv_block_kernel, img_rows=h),
        out_shape=jax.ShapeDtypeStruct((total_rows, 16 * w), x_nchw.dtype),
        grid=grid,
        in_specs=[
            pl.BlockSpec((rows_per_block, cin * w), lambda i: (i, 0)),
            pl.BlockSpec(wk1.shape, lambda i: (0, 0)),
            pl.BlockSpec(b1row.shape, lambda i: (0, 0)),
            pl.BlockSpec(w2big.shape, lambda i: (0, 0)),
            pl.BlockSpec(w3.shape, lambda i: (0, 0)),
            pl.BlockSpec(memory_space=pltpu.MemorySpace.SMEM),
        ],
        out_specs=pl.BlockSpec((rows_per_block, 16 * w), lambda i: (i, 0)),
        compiler_params=pltpu.CompilerParams(
            dimension_semantics=("parallel",)),
    )(x_rows, wk1, b1row, w2big, w3, scal)

    # (n*H, 16W) row-major == (n, 1, 4H, 4W) row-major: free reshape.
    return out.reshape(n, 1, 4 * h, 4 * w)


def up_conv_block_forward(x_nchw, prep):
    n, _, h, _ = x_nchw.shape
    # v7x (2 TensorCores/chip): keep a parallel one-image-per-core grid.
    # v5e/v6e (single TC): fold the whole batch into one grid step.
    rows_per_block = h if (_has_multiple_tensorcores() and n > 1) else n * h
    return _forward_jit(x_nchw, prep, rows_per_block)


# ---------------------------------------------------------------------------
# Parameters & pure-JAX reference (identical semantics to the PyTorch module)
# ---------------------------------------------------------------------------
def make_params(in_features, up_scale, key):
    constant_features = 16
    params = []
    cin = in_features
    for i in range(up_scale):
        cout = 1 if i == up_scale - 1 else constant_features
        key, k1, k2, k3, k4 = jax.random.split(key, 5)
        conv_w = 0.1 * jax.random.normal(k1, (cout, cin, 1, 1), jnp.float32)
        conv_b = 0.1 * jax.random.normal(k2, (cout,), jnp.float32)
        deconv_w = 0.1 * jax.random.normal(k3, (cout, cout, 4, 4), jnp.float32)
        deconv_b = 0.1 * jax.random.normal(k4, (cout,), jnp.float32)
        params.append((conv_w, conv_b, deconv_w, deconv_b))
        cin = cout
    return params


def reference_forward(x_nchw, params):
    x = x_nchw
    for conv_w, conv_b, deconv_w, deconv_b in params:
        y = lax.conv_general_dilated(
            x, conv_w, (1, 1), 'VALID',
            dimension_numbers=('NCHW', 'OIHW', 'NCHW'))
        y = jnp.maximum(y + conv_b[None, :, None, None], 0.0)
        # ConvTranspose2d(k=4, s=2, p=1) == dilated conv with flipped kernel
        w_conv = jnp.transpose(deconv_w, (1, 0, 2, 3))[:, :, ::-1, ::-1]
        x = lax.conv_general_dilated(
            y, w_conv, (1, 1), ((2, 2), (2, 2)), lhs_dilation=(2, 2),
            dimension_numbers=('NCHW', 'OIHW', 'NCHW'))
        x = x + deconv_b[None, :, None, None]
    return x


if __name__ == "__main__":
    in_features, up_scale = 4, 2
    key = jax.random.PRNGKey(0)
    key, kx = jax.random.split(key)
    x = jax.random.normal(kx, (2, in_features, 16, 16), jnp.float32)
    params = make_params(in_features, up_scale, key)

    prep = prepare_weights(params, W=x.shape[-1])      # hoisted: runs once

    out = jax.block_until_ready(up_conv_block_forward(x, prep))
    assert out.shape == (2, 1, 16 * 2 ** up_scale, 16 * 2 ** up_scale), out.shape

    ref = jax.block_until_ready(reference_forward(x, params))
    np.testing.assert_allclose(np.asarray(out), np.asarray(ref),
                               rtol=2e-3, atol=1e-3)
    print("KERNEL_OK")
</pallas_src>

<mosaic_0001>
module attributes {stable_mosaic.version = 11 : i64} {
  func.func @_up_conv_block_kernel(%arg0: i32, %arg1: memref<32x64xf32, #tpu.memory_space<vmem>>, %arg2: memref<64x256xf32, #tpu.memory_space<vmem>>, %arg3: memref<1x256xf32, #tpu.memory_space<vmem>>, %arg4: memref<768x64xf32, #tpu.memory_space<vmem>>, %arg5: memref<192x256xf32, #tpu.memory_space<vmem>>, %arg6: memref<2xf32, #tpu.memory_space<smem>>, %arg7: memref<32x256xf32, #tpu.memory_space<vmem>>) attributes {dimension_semantics = [#tpu.dimension_semantics<parallel>], iteration_bounds = array<i64: 1>, scalar_prefetch = 0 : i64, scratch_operands = 0 : i64, tpu.core_type = #tpu.core_type<tc>, window_params = [{transform_indices = @transform_0, window_bounds = array<i64: 32, 64>}, {pipeline_mode = #tpu.pipeline_mode<synchronous>, transform_indices = @transform_1, window_bounds = array<i64: 64, 256>}, {pipeline_mode = #tpu.pipeline_mode<synchronous>, transform_indices = @transform_2, window_bounds = array<i64: 1, 256>}, {pipeline_mode = #tpu.pipeline_mode<synchronous>, transform_indices = @transform_3, window_bounds = array<i64: 768, 64>}, {pipeline_mode = #tpu.pipeline_mode<synchronous>, transform_indices = @transform_4, window_bounds = array<i64: 192, 256>}, {transform_indices = @transform_5, window_bounds = array<i64: 2>}, {transform_indices = @transform_6, window_bounds = array<i64: 32, 256>}]} {
    %0 = tpu.iota {dimensions = array<i32: 0>} : vector<32x1xi32>
    %c15_i32 = arith.constant 15 : i32
    %1 = vector.broadcast %c15_i32 : i32 to vector<32x1xi32>
    %2 = arith.andi %0, %1 : vector<32x1xi32>
    %c0_i32 = arith.constant 0 : i32
    %3 = vector.broadcast %c0_i32 : i32 to vector<32x1xi32>
    %4 = arith.cmpi ne, %2, %3 : vector<32x1xi32>
    %c15_i32_0 = arith.constant 15 : i32
    %5 = vector.broadcast %c15_i32_0 : i32 to vector<32x1xi32>
    %6 = arith.cmpi ne, %2, %5 : vector<32x1xi32>
    %c0 = arith.constant 0 : index
    %c0_1 = arith.constant 0 : index
    %7 = vector.load %arg1[%c0, %c0_1] : memref<32x64xf32, #tpu.memory_space<vmem>>, vector<32x64xf32>
    %c0_2 = arith.constant 0 : index
    %c0_3 = arith.constant 0 : index
    %8 = vector.load %arg2[%c0_2, %c0_3] : memref<64x256xf32, #tpu.memory_space<vmem>>, vector<64x256xf32>
    %cst = arith.constant dense<0.000000e+00> : vector<32x256xf32>
    %9 = tpu.matmul %7, %8, %cst {dimension_numbers = #tpu.dot_dimension_numbers<[1], [0], [0], [1], [0, 0, 1, 1], [], []>} : vector<32x64xf32>, vector<64x256xf32>, vector<32x256xf32> -> vector<32x256xf32>
    %c0_4 = arith.constant 0 : index
    %c0_5 = arith.constant 0 : index
    %10 = vector.load %arg3[%c0_4, %c0_5] : memref<1x256xf32, #tpu.memory_space<vmem>>, vector<1x256xf32>
    %11 = vector.broadcast %10 : vector<1x256xf32> to vector<32x256xf32>
    %12 = arith.addf %9, %11 : vector<32x256xf32>
    %cst_6 = arith.constant 0.000000e+00 : f32
    %13 = vector.broadcast %cst_6 : f32 to vector<32x256xf32>
    %14 = arith.maximumf %12, %13 : vector<32x256xf32>
    %cst_7 = arith.constant 0.000000e+00 : f32
    %15 = vector.broadcast %cst_7 : f32 to vector<1x256xf32>
    %16 = vector.extract_strided_slice %14 {offsets = [0, 0], sizes = [31, 256], strides = [1, 1]} : vector<32x256xf32> to vector<31x256xf32>
    %17 = tpu.concatenate %15, %16 in 0 : vector<1x256xf32>, vector<31x256xf32> -> vector<32x256xf32>
    %18 = vector.extract_strided_slice %14 {offsets = [1, 0], sizes = [31, 256], strides = [1, 1]} : vector<32x256xf32> to vector<31x256xf32>
    %19 = tpu.concatenate %18, %15 in 0 : vector<31x256xf32>, vector<1x256xf32> -> vector<32x256xf32>
    %cst_8 = arith.constant 0.000000e+00 : f32
    %20 = vector.shape_cast %4 : vector<32x1xi1> to vector<32x1xi1>
    %21 = vector.broadcast %20 : vector<32x1xi1> to vector<32x256xi1>
    %22 = vector.broadcast %cst_8 : f32 to vector<32x256xf32>
    %23 = arith.select %21, %17, %22 : vector<32x256xi1>, vector<32x256xf32>
    %cst_9 = arith.constant 0.000000e+00 : f32
    %24 = vector.shape_cast %6 : vector<32x1xi1> to vector<32x1xi1>
    %25 = vector.broadcast %24 : vector<32x1xi1> to vector<32x256xi1>
    %26 = vector.broadcast %cst_9 : f32 to vector<32x256xf32>
    %27 = arith.select %25, %19, %26 : vector<32x256xi1>, vector<32x256xf32>
    %28 = tpu.concatenate %23, %14, %27 in 1 : vector<32x256xf32>, vector<32x256xf32>, vector<32x256xf32> -> vector<32x768xf32>
    %c0_10 = arith.constant 0 : index
    %c0_11 = arith.constant 0 : index
    %29 = vector.load %arg4[%c0_10, %c0_11] : memref<768x64xf32, #tpu.memory_space<vmem>>, vector<768x64xf32>
    %cst_12 = arith.constant dense<0.000000e+00> : vector<32x64xf32>
    %30 = tpu.matmul %28, %29, %cst_12 {dimension_numbers = #tpu.dot_dimension_numbers<[1], [0], [0], [1], [0, 0, 1, 1], [], []>} : vector<32x768xf32>, vector<768x64xf32>, vector<32x64xf32> -> vector<32x64xf32>
    %c0_13 = arith.constant 0 : index
    %31 = memref.load %arg6[%c0_13] : memref<2xf32, #tpu.memory_space<smem>>
    %32 = vector.broadcast %31 : f32 to vector<32x64xf32>
    %33 = arith.addf %30, %32 : vector<32x64xf32>
    %cst_14 = arith.constant 0.000000e+00 : f32
    %34 = vector.broadcast %cst_14 : f32 to vector<32x64xf32>
    %35 = arith.maximumf %33, %34 : vector<32x64xf32>
    %cst_15 = arith.constant 0.000000e+00 : f32
    %36 = vector.broadcast %cst_15 : f32 to vector<1x64xf32>
    %37 = vector.extract_strided_slice %35 {offsets = [0, 0], sizes = [31, 64], strides = [1, 1]} : vector<32x64xf32> to vector<31x64xf32>
    %38 = tpu.concatenate %36, %37 in 0 : vector<1x64xf32>, vector<31x64xf32> -> vector<32x64xf32>
    %39 = vector.extract_strided_slice %35 {offsets = [1, 0], sizes = [31, 64], strides = [1, 1]} : vector<32x64xf32> to vector<31x64xf32>
    %40 = tpu.concatenate %39, %36 in 0 : vector<31x64xf32>, vector<1x64xf32> -> vector<32x64xf32>
    %cst_16 = arith.constant 0.000000e+00 : f32
    %41 = vector.shape_cast %4 : vector<32x1xi1> to vector<32x1xi1>
    %42 = vector.broadcast %41 : vector<32x1xi1> to vector<32x64xi1>
    %43 = vector.broadcast %cst_16 : f32 to vector<32x64xf32>
    %44 = arith.select %42, %38, %43 : vector<32x64xi1>, vector<32x64xf32>
    %cst_17 = arith.constant 0.000000e+00 : f32
    %45 = vector.shape_cast %6 : vector<32x1xi1> to vector<32x1xi1>
    %46 = vector.broadcast %45 : vector<32x1xi1> to vector<32x64xi1>
    %47 = vector.broadcast %cst_17 : f32 to vector<32x64xf32>
    %48 = arith.select %46, %40, %47 : vector<32x64xi1>, vector<32x64xf32>
    %49 = tpu.concatenate %44, %35, %48 in 1 : vector<32x64xf32>, vector<32x64xf32>, vector<32x64xf32> -> vector<32x192xf32>
    %c0_18 = arith.constant 0 : index
    %c0_19 = arith.constant 0 : index
    %50 = vector.load %arg5[%c0_18, %c0_19] : memref<192x256xf32, #tpu.memory_space<vmem>>, vector<192x256xf32>
    %cst_20 = arith.constant dense<0.000000e+00> : vector<32x256xf32>
    %51 = tpu.matmul %49, %50, %cst_20 {dimension_numbers = #tpu.dot_dimension_numbers<[1], [0], [0], [1], [0, 0, 1, 1], [], []>} : vector<32x192xf32>, vector<192x256xf32>, vector<32x256xf32> -> vector<32x256xf32>
    %c1 = arith.constant 1 : index
    %52 = memref.load %arg6[%c1] : memref<2xf32, #tpu.memory_space<smem>>
    %53 = vector.broadcast %52 : f32 to vector<32x256xf32>
    %54 = arith.addf %51, %53 : vector<32x256xf32>
    %c0_21 = arith.constant 0 : index
    %c0_22 = arith.constant 0 : index
    %55 = vector.load %arg7[%c0_21, %c0_22] : memref<32x256xf32, #tpu.memory_space<vmem>>, vector<32x256xf32>
    tpu.vector_store %arg7[%c0_21, %c0_22], %54 {strides = array<i32>} : memref<32x256xf32, #tpu.memory_space<vmem>>, vector<32x256xf32>,
    return
  }
  func.func @transform_0(%arg0: i32) -> (i32, i32) {
    %c0_i32 = arith.constant 0 : i32
    %c0_i32_0 = arith.constant 0 : i32
    return %arg0, %c0_i32 : i32, i32
  }
  func.func @transform_1(%arg0: i32) -> (i32, i32) {
    %c0_i32 = arith.constant 0 : i32
    %c0_i32_0 = arith.constant 0 : i32
    %c0_i32_1 = arith.constant 0 : i32
    return %c0_i32, %c0_i32_0 : i32, i32
  }
  func.func @transform_2(%arg0: i32) -> (i32, i32) {
    %c0_i32 = arith.constant 0 : i32
    %c0_i32_0 = arith.constant 0 : i32
    %c0_i32_1 = arith.constant 0 : i32
    return %c0_i32, %c0_i32_0 : i32, i32
  }
  func.func @transform_3(%arg0: i32) -> (i32, i32) {
    %c0_i32 = arith.constant 0 : i32
    %c0_i32_0 = arith.constant 0 : i32
    %c0_i32_1 = arith.constant 0 : i32
    return %c0_i32, %c0_i32_0 : i32, i32
  }
  func.func @transform_4(%arg0: i32) -> (i32, i32) {
    %c0_i32 = arith.constant 0 : i32
    %c0_i32_0 = arith.constant 0 : i32
    %c0_i32_1 = arith.constant 0 : i32
    return %c0_i32, %c0_i32_0 : i32, i32
  }
  func.func @transform_5(%arg0: i32) -> i32 {
    %c0_i32 = arith.constant 0 : i32
    %c0_i32_0 = arith.constant 0 : i32
    return %c0_i32 : i32
  }
  func.func @transform_6(%arg0: i32) -> (i32, i32) {
    %c0_i32 = arith.constant 0 : i32
    %c0_i32_0 = arith.constant 0 : i32
    return %arg0, %c0_i32 : i32, i32
  }
}

</mosaic_0001>

<bundles_post_ra>
// kernel: _forward_jit.1
= control target key start
LH: loop header
LB: loop body
LE: loop exit
PB: predicated region body
PF: predicated region fallthrough
CT: control target
= control target key end

     0   :  { %11 = vsyncpa [#allocation3], 0  ;;  %s1864_s0 = inlined_call_operand.vmem [shape: f32[32,64], index: 0, kind: input, shape index: {}]   ;;  %s1865_s1 = inlined_call_operand.vmem [shape: f32[64,256], index: 1, kind: input, shape index: {}]   ;;  %s1866_s2 = inlined_call_operand.vmem [shape: f32[1,256], index: 2, kind: input, shape index: {}]   ;;  %s1867_s3 = inlined_call_operand.vmem [shape: f32[768,64], index: 3, kind: input, shape index: {}]   ;;  %s1868_s4 = inlined_call_operand.vmem [shape: f32[192,256], index: 4, kind: input, shape index: {}]   ;;  %s1869_s5 = inlined_call_operand.vmem [shape: f32[2], index: 5, kind: input, shape index: {}]   ;;  %s1870_s6 = inlined_call_operand.vmem [shape: f32[32,256], index: 6, kind: output, shape index: {}]  }
   0x1   :  { %s28_s23 = sshll.u32 %s1869_s5, 4  ;;  %s29_s23 = int_to_ptr.vmem [resolvable:$true] %s28_s23 }
   0x2   :  { %s1170_s24 = scalar_lea.vmem %s29_s23, 16  ;;  %p1175_p1 = scmp.lt.s32.totalorder %s29_s23, %s29_s23 }
   0x3   :  { %p1171_p0 = scmp.ne.s32.totalorder %s29_s23, %s1170_s24  ;;  %p1176_p2 = scmp.lt.s32.totalorder %s1170_s24, %s1170_s24 }
   0x5   :  { %p1177_p3 = por %p1176_p2, %p1175_p1 }
   0x7   :  { %p1178_p4 = pnand %p1177_p3, %p1171_p0 }
   0x9   :  { %1181 = shalt.err (!%p1178_p4)
}
   0xa   :  { %s1184_s25 = smov [#allocation2]  }
   0xb   :  { %31 = dma.vmem_to_smem %s29_s23, 16, %s1184_s25, [#allocation3]  }
   0xc   :  { %1182 = dma.done.wait [#allocation3], 16  }
   0xd   :  { %1183 = vsyncadd [#allocation3], 4294967280 }
   0xe   :  { %35 = sfence }
   0xf   :  { %v58_v0 = vld [vmem:[%s1865_s1 + $0x8] sm:$0xff]  ;;  %v60_v1 = vld [vmem:[%s1865_s1 + $0x18] sm:$0xff]  ;;  %v57_v2 = vld [vmem:[%s1865_s1] sm:$0xff]  ;;  %v1185_v7 = vmov 0.0   ;;  %vm85_vm0 = vcmask 523264   ;;  %vm203_vm1 = vcmask 1040384  }
  0x10   :  { %v1007_v3 = vpack.c.bf16 %v60_v1, %v58_v0  ;;  %v59_v4 = vld [vmem:[%s1865_s1 + $0x10] sm:$0xff]  ;;  %v62_v5 = vld [vmem:[%s1865_s1 + $0x28] sm:$0xff]  ;;  %v64_v6 = vld [vmem:[%s1865_s1 + $0x38] sm:$0xff]  ;;  %162 = vmatprep.mubr.f32.mxu1 %v1185_v7  ;;  %vm228_vm3 = vcmask 1046528   ;;  %s381_s28 = sld [smem:[#allocation2]]  ;;  %s870_s29 = sld [smem:[#allocation2 + $0x1]] }
  0x11   :  { %v1009_v8 = vpack.c.bf16 %v59_v4, %v57_v2  ;;  %v1011_v9 = vpack.c.bf16 %v64_v6, %v62_v5  ;;  %v61_v10 = vld [vmem:[%s1865_s1 + $0x20] sm:$0xff]  ;;  %v63_v11 = vld [vmem:[%s1865_s1 + $0x30] sm:$0xff]  ;;  %v66_v12 = vld [vmem:[%s1865_s1 + $0x48] sm:$0xff] }
  0x12   :  { %1008 = vmatprep.subr.bf16.mxu1 %v1007_v3  ;;  %v68_v13 = vld [vmem:[%s1865_s1 + $0x58] sm:$0xff]  ;;  %v1013_v14 = vpack.c.bf16 %v63_v11, %v61_v10  ;;  %v65_v16 = vld [vmem:[%s1865_s1 + $0x40] sm:$0xff]  ;;  %v67_v17 = vld [vmem:[%s1865_s1 + $0x50] sm:$0xff] }
  0x13   :  { %1010 = vmatpush1.bf16.msra.mxu1 %v1009_v8  ;;  %v1015_v15 = vpack.c.bf16 %v68_v13, %v66_v12  ;;  %v70_v18 = vld [vmem:[%s1865_s1 + $0x68] sm:$0xff]  ;;  %v72_v19 = vld [vmem:[%s1865_s1 + $0x78] sm:$0xff]  ;;  %v333_v20 = vld [vmem:[%s1867_s3 + $0x180] sm:$0xff]  ;;  %v1017_v24 = vpack.c.bf16 %v67_v17, %v65_v16 }
  0x14   :  { %1012 = vmatprep.subr.bf16.mxu1 %v1011_v9  ;;  %v334_v21 = vld [vmem:[%s1867_s3 + $0x188] sm:$0xff]  ;;  %v317_v22 = vld [vmem:[%s1867_s3 + $0x100] sm:$0xff]  ;;  %v71_v26 = vld [vmem:[%s1865_s1 + $0x70] sm:$0xff]  ;;  %v1019_v29 = vpack.c.bf16 %v72_v19, %v70_v18 }
  0x15   :  { %v318_v23 = vld [vmem:[%s1867_s3 + $0x108] sm:$0xff]  ;;  %v69_v25 = vld [vmem:[%s1865_s1 + $0x60] sm:$0xff]  ;;  %v1055_v27 = vpack.c.bf16 %v334_v21, %v333_v20  ;;  %v335_v31 = vld [vmem:[%s1867_s3 + $0x190] sm:$0xff] }
  0x16   :  { %v1057_v28 = vpack.c.bf16 %v318_v23, %v317_v22  ;;  %v301_v30 = vld [vmem:[%s1867_s3 + $0x80] sm:$0xff]  ;;  %v336_v32 = vld [vmem:[%s1867_s3 + $0x198] sm:$0xff]  ;;  %v302_v33 = vld [vmem:[%s1867_s3 + $0x88] sm:$0xff]  ;;  %v1021_v38 = vpack.c.bf16 %v71_v26, %v69_v25 }
  0x17   :  { %1014 = vmatpush1.bf16.msra.mxu1 %v1013_v14  ;;  %1056 = vmatprep.subr.bf16.mxu0 %v1055_v27  ;;  %v1059_v34 = vpack.c.bf16 %v336_v32, %v335_v31  ;;  %v319_v35 = vld [vmem:[%s1867_s3 + $0x110] sm:$0xff]  ;;  %v320_v36 = vld [vmem:[%s1867_s3 + $0x118] sm:$0xff]  ;;  %v337_v39 = vld [vmem:[%s1867_s3 + $0x1a0] sm:$0xff]  ;;  %v1023_v42 = vpack.c.bf16 %v302_v33, %v301_v30 }
  0x18   :  { %1016 = vmatprep.subr.bf16.mxu1 %v1015_v15  ;;  %1058 = vmatpush3.bf16.msra.mxu0 %v1057_v28  ;;  %v1061_v37 = vpack.c.bf16 %v320_v36, %v319_v35  ;;  %v338_v40 = vld [vmem:[%s1867_s3 + $0x1a8] sm:$0xff]  ;;  %v321_v41 = vld [vmem:[%s1867_s3 + $0x120] sm:$0xff]  ;;  %v303_v47 = vld [vmem:[%s1867_s3 + $0x90] sm:$0xff] }
  0x19   :  { %1060 = vmatprep.subr.bf16.mxu0 %v1059_v34  ;;  %v285_v43 = vld [vmem:[%s1867_s3] sm:$0xff]  ;;  %v286_v44 = vld [vmem:[%s1867_s3 + $0x8] sm:$0xff]  ;;  %v1063_v45 = vpack.c.bf16 %v338_v40, %v337_v39  ;;  %v304_v48 = vld [vmem:[%s1867_s3 + $0x98] sm:$0xff] }
  0x1a   :  { %v322_v46 = vld [vmem:[%s1867_s3 + $0x128] sm:$0xff]  ;;  %v339_v49 = vld [vmem:[%s1867_s3 + $0x1b0] sm:$0xff]  ;;  %v340_v51 = vld [vmem:[%s1867_s3 + $0x1b8] sm:$0xff]  ;;  %v1025_v53 = vpack.c.bf16 %v286_v44, %v285_v43  ;;  %v1027_v56 = vpack.c.bf16 %v304_v48, %v303_v47 }
  0x1b   :  { %1018 = vmatpush1.bf16.msra.mxu1 %v1017_v24  ;;  %v1065_v50 = vpack.c.bf16 %v322_v46, %v321_v41  ;;  %v53_v52 = vld [vmem:[%s1864_s0] sm:$0xff]  ;;  %v323_v54 = vld [vmem:[%s1867_s3 + $0x130] sm:$0xff]  ;;  %v324_v55 = vld [vmem:[%s1867_s3 + $0x138] sm:$0xff]  ;;  %v1067_v60 = vpack.c.bf16 %v340_v51, %v339_v49 }
  0x1c   :  { %1020 = vmatprep.subr.bf16.mxu1 %v1019_v29  ;;  %1062 = vmatpush3.bf16.msra.mxu0 %v1061_v37  ;;  %v287_v57 = vld [vmem:[%s1867_s3 + $0x10] sm:$0xff]  ;;  %v288_v58 = vld [vmem:[%s1867_s3 + $0x18] sm:$0xff]  ;;  %v305_v59 = vld [vmem:[%s1867_s3 + $0xa0] sm:$0xff]  ;;  %v1069_v0 = vpack.c.bf16 %v324_v55, %v323_v54 }
  0x1d   :  { %1064 = vmatprep.subr.bf16.mxu0 %v1063_v45  ;;  %v306_v61 = vld [vmem:[%s1867_s3 + $0xa8] sm:$0xff]  ;;  %v341_v62 = vld [vmem:[%s1867_s3 + $0x1c0] sm:$0xff]  ;;  %v1029_v2 = vpack.c.bf16 %v288_v58, %v287_v57  ;;  %v307_v9 = vld [vmem:[%s1867_s3 + $0xb0] sm:$0xff] }
  0x1e   :  { %v342_v63 = vld [vmem:[%s1867_s3 + $0x1c8] sm:$0xff]  ;;  %v325_v3 = vld [vmem:[%s1867_s3 + $0x140] sm:$0xff]  ;;  %v1031_v5 = vpack.c.bf16 %v306_v61, %v305_v59  ;;  %v308_v11 = vld [vmem:[%s1867_s3 + $0xb8] sm:$0xff] }
  0x1f   :  { %1022 = vmatpush1.bf16.msra.mxu1 %v1021_v38  ;;  %v54_v1 = vld [vmem:[%s1864_s0 + $0x8] sm:$0xff]  ;;  %v289_v6 = vld [vmem:[%s1867_s3 + $0x20] sm:$0xff]  ;;  %v1071_v10 = vpack.c.bf16 %v342_v63, %v341_v62  ;;  %v343_v12 = vld [vmem:[%s1867_s3 + $0x1d0] sm:$0xff]  ;;  %v1035_v20 = vpack.c.bf16 %v308_v11, %v307_v9 }
  0x20   :  { %1024 = vmatprep.subr.bf16.mxu1 %v1023_v42  ;;  %1066 = vmatpush3.bf16.msra.mxu0 %v1065_v50  ;;  %v326_v4 = vld [vmem:[%s1867_s3 + $0x148] sm:$0xff]  ;;  %v344_v13 = vld [vmem:[%s1867_s3 + $0x1d8] sm:$0xff]  ;;  %v55_v14 = vld [vmem:[%s1864_s0 + $0x10] sm:$0xff] }
  0x21   :  { %v290_v8 = vld [vmem:[%s1867_s3 + $0x28] sm:$0xff]  ;;  %1068 = vmatprep.subr.bf16.mxu0 %v1067_v60  ;;  %v1073_v15 = vpack.c.bf16 %v326_v4, %v325_v3  ;;  %v291_v17 = vld [vmem:[%s1867_s3 + $0x30] sm:$0xff]  ;;  %v328_v19 = vld [vmem:[%s1867_s3 + $0x158] sm:$0xff]  ;;  %v1075_v22 = vpack.c.bf16 %v344_v13, %v343_v12 }
  0x22   :  { %858 = vmatmul.mubr.msk.f32.vlgmr.msra.gmra.mrb[0].mxu1 %vm85_vm0, %v53_v52  ;;  %v1033_v16 = vpack.c.bf16 %v290_v8, %v289_v6  ;;  %v327_v18 = vld [vmem:[%s1867_s3 + $0x150] sm:$0xff]  ;;  %v292_v21 = vld [vmem:[%s1867_s3 + $0x38] sm:$0xff]  ;;  %v345_v23 = vld [vmem:[%s1867_s3 + $0x1e0] sm:$0xff] }
  0x23   :  { %168 = vmatprep.mubr.f32.mxu1 %v1185_v7  ;;  %1026 = vmatpush3.bf16.msra.mxu1 %v1025_v53  ;;  %v346_v24 = vld [vmem:[%s1867_s3 + $0x1e8] sm:$0xff]  ;;  %v309_v25 = vld [vmem:[%s1867_s3 + $0xc0] sm:$0xff]  ;;  %v1077_v27 = vpack.c.bf16 %v328_v19, %v327_v18  ;;  %v56_v28 = vld [vmem:[%s1864_s0 + $0x18] sm:$0xff]  ;;  %v1037_v29 = vpack.c.bf16 %v292_v21, %v291_v17 }
  0x24   :  { %1028 = vmatprep.subr.bf16.mxu1 %v1027_v56  ;;  %1070 = vmatpush3.bf16.msra.mxu0 %v1069_v0  ;;  %v310_v26 = vld [vmem:[%s1867_s3 + $0xc8] sm:$0xff]  ;;  %v1079_v30 = vpack.c.bf16 %v346_v24, %v345_v23  ;;  %v293_v32 = vld [vmem:[%s1867_s3 + $0x40] sm:$0xff]  ;;  %v312_v34 = vld [vmem:[%s1867_s3 + $0xd8] sm:$0xff]  ;;  %v36_v0 = vlaneseq }
  0x25   :  { %1072 = vmatprep.subr.bf16.mxu0 %v1071_v10  ;;  %v1039_v31 = vpack.c.bf16 %v310_v26, %v309_v25  ;;  %v294_v33 = vld [vmem:[%s1867_s3 + $0x48] sm:$0xff]  ;;  %v295_v37 = vld [vmem:[%s1867_s3 + $0x50] sm:$0xff]  ;;  %v296_v38 = vld [vmem:[%s1867_s3 + $0x58] sm:$0xff] }
  0x26   :  { %859 = vmatmul.mubr.msk.f32.gmra.mrb[2].mxu1 %vm85_vm0, %v54_v1  ;;  %v1041_v35 = vpack.c.bf16 %v294_v33, %v293_v32  ;;  %v1045_v39 = vpack.c.bf16 %v296_v38, %v295_v37  ;;  %v329_v40 = vld [vmem:[%s1867_s3 + $0x160] sm:$0xff]  ;;  %v330_v41 = vld [vmem:[%s1867_s3 + $0x168] sm:$0xff]  ;;  %v347_v49 = vld [vmem:[%s1867_s3 + $0x1f0] sm:$0xff]  ;;  %v1491_v1 = vshrl.u32 %v36_v0, 7 }
  0x27   :  { %174 = vmatprep.mubr.f32.mxu1 %v1185_v7  ;;  %1030 = vmatpush3.bf16.msra.mxu1 %v1029_v2  ;;  %v1081_v42 = vpack.c.bf16 %v330_v41, %v329_v40  ;;  %v313_v43 = vld [vmem:[%s1867_s3 + $0xe0] sm:$0xff]  ;;  %v314_v44 = vld [vmem:[%s1867_s3 + $0xe8] sm:$0xff]  ;;  %v348_v50 = vld [vmem:[%s1867_s3 + $0x1f8] sm:$0xff] }
  0x28   :  { %1032 = vmatprep.subr.bf16.mxu1 %v1031_v5  ;;  %1074 = vmatpush3.bf16.msra.mxu0 %v1073_v15  ;;  %v1047_v45 = vpack.c.bf16 %v314_v44, %v313_v43  ;;  %v297_v46 = vld [vmem:[%s1867_s3 + $0x60] sm:$0xff]  ;;  %v298_v47 = vld [vmem:[%s1867_s3 + $0x68] sm:$0xff]  ;;  %v1083_v51 = vpack.c.bf16 %v348_v50, %v347_v49  ;;  %v331_v52 = vld [vmem:[%s1867_s3 + $0x170] sm:$0xff]  ;;  %v77_v2 = vsub.s32 0, %v1491_v1  ;;  %v81_v4 = vsub.s32 1, %v1491_v1 }
  0x29   :  { %1076 = vmatprep.subr.bf16.mxu0 %v1075_v22  ;;  %v1049_v48 = vpack.c.bf16 %v298_v47, %v297_v46  ;;  %v332_v53 = vld [vmem:[%s1867_s3 + $0x178] sm:$0xff]  ;;  %v315_v55 = vld [vmem:[%s1867_s3 + $0xf0] sm:$0xff]  ;;  %v365_v61 = vld [vmem:[%s1867_s3 + $0x280] sm:$0xff]  ;;  %v41_v12 = vand.u32 15, %v1491_v1 }
  0x2a   :  { %860 = vmatmul.mubr.msk.f32.gmra.mrb[4].mxu1 %vm85_vm0, %v55_v14  ;;  %v1085_v54 = vpack.c.bf16 %v332_v53, %v331_v52  ;;  %v316_v56 = vld [vmem:[%s1867_s3 + $0xf8] sm:$0xff]  ;;  %v299_v58 = vld [vmem:[%s1867_s3 + $0x70] sm:$0xff]  ;;  %v366_v62 = vld [vmem:[%s1867_s3 + $0x288] sm:$0xff] }
  0x2b   :  { %180 = vmatprep.mubr.f32.mxu1 %v1185_v7  ;;  %1034 = vmatpush3.bf16.msra.mxu1 %v1033_v16  ;;  %v311_v7 = vld [vmem:[%s1867_s3 + $0xd0] sm:$0xff]  ;;  %v1051_v57 = vpack.c.bf16 %v316_v56, %v315_v55  ;;  %v300_v59 = vld [vmem:[%s1867_s3 + $0x78] sm:$0xff]  ;;  %v1087_v63 = vpack.c.bf16 %v366_v62, %v365_v61  ;;  %v73_v3 = vld [vmem:[%s1866_s2] sm:$0x3]  ;;  %vm1520_vm2 = vcmp.ne.s32.totalorder %v41_v12, 0 }
  0x2c   :  { %1036 = vmatprep.subr.bf16.mxu1 %v1035_v20  ;;  %1078 = vmatpush3.bf16.msra.mxu0 %v1077_v27  ;;  %v1043_v36 = vpack.c.bf16 %v312_v34, %v311_v7  ;;  %v1053_v60 = vpack.c.bf16 %v300_v59, %v299_v58  ;;  %v1498_v5 = vrot.slane %v73_v3, %v77_v2  ;;  %v349_v14 = vld [vmem:[%s1867_s3 + $0x200] sm:$0xff]  ;;  %v350_v17 = vld [vmem:[%s1867_s3 + $0x208] sm:$0xff]  ;;  %v367_v18 = vld [vmem:[%s1867_s3 + $0x290] sm:$0xff]  ;;  %v39_v20 = vadd.s32 16, %v1491_v1 }
  0x2d   :  { %1080 = vmatprep.subr.bf16.mxu0 %v1079_v30  ;;  %v1500_v6 = vrot.slane %v73_v3, %v81_v4  ;;  %v368_v19 = vld [vmem:[%s1867_s3 + $0x298] sm:$0xff]  ;;  %v351_v30 = vld [vmem:[%s1867_s3 + $0x210] sm:$0xff]  ;;  %v369_v41 = vld [vmem:[%s1867_s3 + $0x2a0] sm:$0xff] }
  0x2e   :  { %861 = vmatmul.mubr.msk.f32.gmra.mrb[6].mxu1 %vm85_vm0, %v56_v28  ;;  %v1089_v28 = vpack.c.bf16 %v350_v17, %v349_v14  ;;  %v352_v34 = vld [vmem:[%s1867_s3 + $0x218] sm:$0xff]  ;;  %v353_v55 = vld [vmem:[%s1867_s3 + $0x220] sm:$0xff]  ;;  %v354_v56 = vld [vmem:[%s1867_s3 + $0x228] sm:$0xff] }
  0x2f   :  { %1038 = vmatpush3.bf16.msra.mxu1 %v1037_v29  ;;  %v1091_v29 = vpack.c.bf16 %v368_v19, %v367_v18  ;;  %v1093_v49 = vpack.c.bf16 %v352_v34, %v351_v30  ;;  %v371_v62 = vld [vmem:[%s1867_s3 + $0x2b0] sm:$0xff]  ;;  %v356_v14 = vld [vmem:[%s1867_s3 + $0x238] sm:$0xff]  ;;  %v373_v18 = vld [vmem:[%s1867_s3 + $0x2c0] sm:$0xff] }
  0x30   :  { %1040 = vmatprep.subr.bf16.mxu1 %v1039_v31  ;;  %1082 = vmatpush3.bf16.msra.mxu0 %v1081_v42  ;;  %v370_v42 = vld [vmem:[%s1867_s3 + $0x2a8] sm:$0xff]  ;;  %v359_v34 = vld [vmem:[%s1867_s3 + $0x250] sm:$0xff] }
  0x31   :  { %1084 = vmatprep.subr.bf16.mxu0 %v1083_v51  ;;  %v374_v19 = vld [vmem:[%s1867_s3 + $0x2c8] sm:$0xff] }
  0x33   :  { %1042 = vmatpush3.bf16.msra.mxu1 %v1041_v35  ;;  %v43_v35 = vand.u32 15, %v39_v20 }
  0x34   :  { %1044 = vmatprep.subr.bf16.mxu1 %v1043_v36  ;;  %1086 = vmatpush3.bf16.msra.mxu0 %v1085_v54  ;;  %v1095_v54 = vpack.c.bf16 %v370_v42, %v369_v41  ;;  %v362_v41 = vld [vmem:[%s1867_s3 + $0x268] sm:$0xff]  ;;  %v379_v42 = vld [vmem:[%s1867_s3 + $0x2f0] sm:$0xff] }
  0x35   :  { %vm1564_vm4 = vcmp.ne.s32.totalorder %v43_v35, 0  ;;  %v360_v35 = vld [vmem:[%s1867_s3 + $0x258] sm:$0xff] }
  0x37   :  { %1046 = vmatpush3.bf16.msra.mxu1 %v1045_v39 }
  0x38   :  { %1048 = vmatprep.subr.bf16.mxu1 %v1047_v45 }
  0x3b   :  { %1050 = vmatpush3.bf16.msra.mxu1 %v1049_v48 }
  0x3c   :  { %1052 = vmatprep.subr.bf16.mxu1 %v1051_v57 }
  0x3f   :  { %1054 = vmatpush3.bf16.msra.mxu1 %v1053_v60 }
  0x40   :  { %1088 = vmatprep.subr.bf16.mxu1 %v1087_v63  ;;  %v372_v63 = vld [vmem:[%s1867_s3 + $0x2b8] sm:$0xff] }
  0x41   :  { %v1099_v12 = vpack.c.bf16 %v372_v63, %v371_v62  ;;  %v701_v62 = vld [vmem:[%s1868_s4 + $0x38] sm:$0xff] }
  0xf5   :  { %v164_v8 = vpop.f32.mrb[0].mxu1 }
  0xf6   :  { %v165_v9 = vadd.f32 %v164_v8, %v1498_v5  ;;  %v166_v10 = vpop.f32.mrb[1].mxu1 }
  0xf7   :  { %v167_v11 = vadd.f32 %v166_v10, %v1500_v6 }
  0xf8   :  { %v187_v13 = vmax.f32 %v165_v9, 0.0  ;;  %v1097_v9 = vpack.c.bf16 %v354_v56, %v353_v55 }
  0xf9   :  { %v188_v15 = vmax.f32 %v167_v11, 0.0  ;;  %v170_v16 = vpop.f32.mrb[2].mxu1 }
  0xfa   :  { %v204_v21 = vrot.slane %v187_v13, 7  ;;  %v171_v22 = vadd.f32 %v170_v16, %v1498_v5  ;;  %v172_v23 = vpop.f32.mrb[3].mxu1  ;;  %v229_v31 = vrot.slane %v187_v13, 1 }
  0xfb   :  { %v173_v24 = vadd.f32 %v172_v23, %v1500_v6  ;;  %532 = vmatprep.mubr.f32.mxu0 %v188_v15  ;;  %v205_v26 = vrot.slane %v188_v15, 7  ;;  %v232_v43 = vrot.slane %v188_v15, 1 }
  0xfc   :  { %v189_v27 = vmax.f32 %v171_v22, 0.0  ;;  %533 = vmatmul.mubr.f32.vlgmr.msra.gmra.mrb[0].mxu0 %v187_v13  ;;  %v226_v36 = vsel %vm203_vm1, 0.0, %v204_v21  ;;  %v355_v13 = vld [vmem:[%s1867_s3 + $0x230] sm:$0xff] }
  0xfd   :  { %v190_v32 = vmax.f32 %v173_v24, 0.0  ;;  %v176_v33 = vpop.f32.mrb[4].mxu1  ;;  %v227_v7 = vsel %vm203_vm1, 0.0, %v205_v26  ;;  %v1101_v23 = vpack.c.bf16 %v356_v14, %v355_v13  ;;  %v709_v13 = vld [vmem:[%s1868_s4 + $0x78] sm:$0xff] }
  0xfe   :  { %v206_v37 = vrot.slane %v189_v27, 7  ;;  %v230_v38 = vrot.slane %v189_v27, 1  ;;  %v177_v39 = vadd.f32 %v176_v33, %v1498_v5  ;;  %v178_v40 = vpop.f32.mrb[5].mxu1  ;;  %862 = vmatprep.mubr.msk.f32.mxu1 %vm1520_vm2, %v227_v7 }
  0xff   :  { %v208_v44 = vrot.slane %v190_v32, 7  ;;  %v233_v45 = vrot.slane %v190_v32, 1  ;;  %v179_v46 = vadd.f32 %v178_v40, %v1500_v6  ;;  %863 = vmatmul.mubr.msk.f32.vlgmr.msra.gmra.mrb[8].mxu1 %vm1520_vm2, %v226_v36  ;;  %537 = vmatprep.mubr.f32.mxu0 %v190_v32  ;;  %v376_v32 = vld [vmem:[%s1867_s3 + $0x2d8] sm:$0xff]  ;;  %v377_v36 = vld [vmem:[%s1867_s3 + $0x2e0] sm:$0xff] }
 0x100   :  { %v191_v47 = vmax.f32 %v177_v39, 0.0  ;;  %1090 = vmatpush3.bf16.msra.mxu1 %v1089_v28  ;;  %v207_v48 = vsel %vm203_vm1, %v204_v21, %v206_v37  ;;  %538 = vmatmul.mubr.f32.gmra.mrb[2].mxu0 %v189_v27  ;;  %v1546_v50 = vsel %vm228_vm3, %v229_v31, %v230_v38  ;;  %v1103_v27 = vpack.c.bf16 %v374_v19, %v373_v18  ;;  %v357_v28 = vld [vmem:[%s1867_s3 + $0x240] sm:$0xff]  ;;  %v375_v31 = vld [vmem:[%s1867_s3 + $0x2d0] sm:$0xff]  ;;  %v711_v18 = vld [vmem:[%s1868_s4 + $0x88] sm:$0xff] }
 0x101   :  { %v192_v51 = vmax.f32 %v179_v46, 0.0  ;;  %v182_v52 = vpop.f32.mrb[6].mxu1  ;;  %v209_v53 = vsel %vm203_vm1, %v205_v26, %v208_v44  ;;  %1092 = vmatprep.subr.bf16.mxu1 %v1091_v29  ;;  %v234_v57 = vsel %vm228_vm3, %v232_v43, %v233_v45  ;;  %v358_v29 = vld [vmem:[%s1867_s3 + $0x248] sm:$0xff]  ;;  %v1107_v7 = vpack.c.bf16 %v376_v32, %v375_v31  ;;  %v361_v40 = vld [vmem:[%s1867_s3 + $0x260] sm:$0xff]  ;;  %v380_v43 = vld [vmem:[%s1867_s3 + $0x2f8] sm:$0xff] }
 0x102   :  { %v210_v58 = vrot.slane %v191_v47, 7  ;;  %v235_v59 = vrot.slane %v191_v47, 1  ;;  %v183_v60 = vadd.f32 %v182_v52, %v1498_v5  ;;  %v184_v61 = vpop.f32.mrb[7].mxu1  ;;  %452 = vmatprep.mubr.f32.mxu1 %v209_v53  ;;  %v1105_v33 = vpack.c.bf16 %v358_v29, %v357_v28  ;;  %v363_v46 = vld [vmem:[%s1867_s3 + $0x270] sm:$0xff]  ;;  %v713_v19 = vld [vmem:[%s1868_s4 + $0x98] sm:$0xff]  ;;  %v714_v29 = vld [vmem:[%s1868_s4 + $0xa0] sm:$0xff] }
 0x103   :  { %v212_v0 = vrot.slane %v192_v51, 7  ;;  %v237_v2 = vrot.slane %v192_v51, 1  ;;  %v185_v3 = vadd.f32 %v184_v61, %v1500_v6  ;;  %453 = vmatmul.mubr.f32.gmra.mrb[10].mxu1 %v207_v48  ;;  %542 = vmatprep.mubr.f32.mxu0 %v192_v51  ;;  %v38_v48 = vadd.s32 8, %v1491_v1  ;;  %v699_v61 = vld [vmem:[%s1868_s4 + $0x28] sm:$0xff]  ;;  %v721_v32 = vld [vmem:[%s1868_s4 + $0xd8] sm:$0xff] }
 0x104   :  { %v1568_v5 = vmax.f32 %v183_v60, 0.0  ;;  %1094 = vmatpush3.bf16.msra.mxu1 %v1093_v49  ;;  %v211_v8 = vsel %vm203_vm1, %v206_v37, %v210_v58  ;;  %543 = vmatmul.mubr.f32.gmra.mrb[4].mxu0 %v191_v47  ;;  %v1572_v10 = vsel %vm228_vm3, %v230_v38, %v235_v59  ;;  %v378_v37 = vld [vmem:[%s1867_s3 + $0x2e8] sm:$0xff]  ;;  %v1109_v38 = vpack.c.bf16 %v360_v35, %v359_v34  ;;  %v364_v47 = vld [vmem:[%s1867_s3 + $0x278] sm:$0xff]  ;;  %v696_v60 = vld [vmem:[%s1868_s4 + $0x10] sm:$0xff] }
 0x105   :  { %v1574_v11 = vmax.f32 %v185_v3, 0.0  ;;  %v213_v6 = vsel %vm203_vm1, %v208_v44, %v212_v0  ;;  %1096 = vmatprep.subr.bf16.mxu1 %v1095_v54  ;;  %v238_v15 = vsel %vm228_vm3, %v233_v45, %v237_v2  ;;  %v1111_v39 = vpack.c.bf16 %v378_v37, %v377_v36  ;;  %v700_v3 = vld [vmem:[%s1868_s4 + $0x30] sm:$0xff]  ;;  %v719_v31 = vld [vmem:[%s1868_s4 + $0xc8] sm:$0xff]  ;;  %v718_v34 = vld [vmem:[%s1868_s4 + $0xc0] sm:$0xff] }
 0x106   :  { %v214_v16 = vrot.slane %v1568_v5, 7  ;;  %v239_v17 = vrot.slane %v1568_v5, 1  ;;  %864 = vmatprep.mubr.msk.f32.mxu1 %vm1564_vm4, %v213_v6  ;;  %v1113_v44 = vpack.c.bf16 %v362_v41, %v361_v40  ;;  %v1115_v45 = vpack.c.bf16 %v380_v43, %v379_v42  ;;  %v704_v6 = vld [vmem:[%s1868_s4 + $0x50] sm:$0xff]  ;;  %v723_v36 = vld [vmem:[%s1868_s4 + $0xe8] sm:$0xff]  ;;  %v725_v37 = vld [vmem:[%s1868_s4 + $0xf8] sm:$0xff] }
 0x107   :  { %v216_v20 = vrot.slane %v1574_v11, 7  ;;  %v241_v21 = vrot.slane %v1574_v11, 1  ;;  %865 = vmatmul.mubr.msk.f32.gmra.mrb[12].mxu1 %vm1564_vm4, %v211_v8  ;;  %547 = vmatprep.mubr.f32.mxu0 %v1574_v11  ;;  %v1117_v49 = vpack.c.bf16 %v364_v47, %v363_v46  ;;  %v42_v51 = vand.u32 15, %v38_v48  ;;  %v705_v8 = vld [vmem:[%s1868_s4 + $0x58] sm:$0xff]  ;;  %v702_v11 = vld [vmem:[%s1868_s4 + $0x40] sm:$0xff]  ;;  %v720_v35 = vld [vmem:[%s1868_s4 + $0xd0] sm:$0xff] }
 0x108   :  { %1098 = vmatpush3.bf16.msra.mxu1 %v1097_v9  ;;  %v215_v22 = vsel %vm203_vm1, %v210_v58, %v214_v16  ;;  %548 = vmatmul.mubr.f32.gmra.mrb[6].mxu0 %v1568_v5  ;;  %v240_v24 = vsel %vm228_vm3, %v235_v59, %v239_v17  ;;  %v40_v53 = vadd.s32 24, %v1491_v1  ;;  %v251_v1 = vsel %vm228_vm3, %v239_v17, 0.0  ;;  %v694_v58 = vld [vmem:[%s1868_s4] sm:$0xff]  ;;  %v703_v5 = vld [vmem:[%s1868_s4 + $0x48] sm:$0xff]  ;;  %v708_v17 = vld [vmem:[%s1868_s4 + $0x70] sm:$0xff] }
 0x109   :  { %v217_v26 = vsel %vm203_vm1, %v212_v0, %v216_v20  ;;  %1100 = vmatprep.subr.bf16.mxu1 %v1099_v12  ;;  %v242_v30 = vsel %vm228_vm3, %v237_v2, %v241_v21  ;;  %vm1649_vm5 = vcmp.ne.s32.totalorder %v42_v51, 15  ;;  %v252_v56 = vsel %vm228_vm3, %v241_v21, 0.0  ;;  %v698_v2 = vld [vmem:[%s1868_s4 + $0x20] sm:$0xff]  ;;  %v707_v12 = vld [vmem:[%s1868_s4 + $0x68] sm:$0xff]  ;;  %v724_v41 = vld [vmem:[%s1868_s4 + $0xf0] sm:$0xff] }
 0x10a   :  { %462 = vmatprep.mubr.f32.mxu1 %v217_v26  ;;  %v44_v54 = vand.u32 15, %v40_v53  ;;  %v1121_v63 = vpack.c.bf16 %v696_v60, %v694_v58  ;;  %v1123_v0 = vpack.c.bf16 %v701_v62, %v699_v61  ;;  %v1125_v9 = vpack.c.bf16 %v700_v3, %v698_v2  ;;  %v706_v16 = vld [vmem:[%s1868_s4 + $0x60] sm:$0xff]  ;;  %v717_v26 = vld [vmem:[%s1868_s4 + $0xb8] sm:$0xff]  ;;  %v727_v42 = vld [vmem:[%s1868_s4 + $0x108] sm:$0xff] }
 0x10b   :  { %463 = vmatmul.mubr.f32.gmra.mrb[14].mxu1 %v215_v22  ;;  %v1129_v14 = vpack.c.bf16 %v704_v6, %v702_v11  ;;  %v1133_v20 = vpack.c.bf16 %v708_v17, %v706_v16  ;;  %v1135_v21 = vpack.c.bf16 %v713_v19, %v711_v18  ;;  %v710_v22 = vld [vmem:[%s1868_s4 + $0x80] sm:$0xff]  ;;  %v729_v43 = vld [vmem:[%s1868_s4 + $0x118] sm:$0xff]  ;;  %v728_v47 = vld [vmem:[%s1868_s4 + $0x110] sm:$0xff]  ;;  %v382_v6 = vstv %s381_s28 }
 0x10c   :  { %1102 = vmatpush3.bf16.msra.mxu1 %v1101_v23  ;;  %617 = vmatprep.mubr.f32.mxu1 %v234_v57  ;;  %vm1660_vm6 = vcmp.ne.s32.totalorder %v44_v54, 15  ;;  %v697_v57 = vld [vmem:[%s1868_s4 + $0x18] sm:$0xff]  ;;  %v712_v23 = vld [vmem:[%s1868_s4 + $0x90] sm:$0xff]  ;;  %v722_v40 = vld [vmem:[%s1868_s4 + $0xe0] sm:$0xff] }
 0x10d   :  { %1104 = vmatprep.subr.bf16.mxu1 %v1103_v27  ;;  %v1137_v27 = vpack.c.bf16 %v712_v23, %v710_v22  ;;  %v726_v46 = vld [vmem:[%s1868_s4 + $0x100] sm:$0xff]  ;;  %v731_v48 = vld [vmem:[%s1868_s4 + $0x128] sm:$0xff]  ;;  %v736_v60 = vld [vmem:[%s1868_s4 + $0x150] sm:$0xff] }
 0x10e   :  { %v1153_v51 = vpack.c.bf16 %v728_v47, %v726_v46  ;;  %v730_v54 = vld [vmem:[%s1868_s4 + $0x120] sm:$0xff]  ;;  %v739_v61 = vld [vmem:[%s1868_s4 + $0x168] sm:$0xff]  ;;  %v741_v62 = vld [vmem:[%s1868_s4 + $0x178] sm:$0xff] }
 0x10f   :  { %v738_v2 = vld [vmem:[%s1868_s4 + $0x160] sm:$0xff]  ;;  %v740_v3 = vld [vmem:[%s1868_s4 + $0x170] sm:$0xff] }
 0x110   :  { %1106 = vmatpush3.bf16.msra.mxu1 %v1105_v33 }
 0x111   :  { %1108 = vmatprep.subr.bf16.mxu1 %v1107_v7  ;;  %v1143_v7 = vpack.c.bf16 %v721_v32, %v719_v31 }
 0x114   :  { %1110 = vmatpush3.bf16.msra.mxu1 %v1109_v38  ;;  %v1145_v38 = vpack.c.bf16 %v720_v35, %v718_v34 }
 0x115   :  { %1112 = vmatprep.subr.bf16.mxu1 %v1111_v39  ;;  %v1147_v39 = vpack.c.bf16 %v725_v37, %v723_v36 }
 0x118   :  { %1114 = vmatpush3.bf16.msra.mxu1 %v1113_v44  ;;  %v1149_v44 = vpack.c.bf16 %v724_v41, %v722_v40 }
 0x119   :  { %1116 = vmatprep.subr.bf16.mxu1 %v1115_v45  ;;  %v1151_v45 = vpack.c.bf16 %v729_v43, %v727_v42 }
 0x11c   :  { %1118 = vmatpush3.bf16.msra.mxu1 %v1117_v49  ;;  %v733_v49 = vld [vmem:[%s1868_s4 + $0x138] sm:$0xff] }
 0x11d   :  { %v1155_v53 = vpack.c.bf16 %v733_v49, %v731_v48 }
 0x11f   :  { %618 = vmatmul.mubr.f32.vlgmr.msra.gmra.mrb[16].mxu1 %v1546_v50  ;;  %v695_v50 = vld [vmem:[%s1868_s4 + $0x8] sm:$0xff] }
 0x120   :  { %866 = vmatprep.mubr.msk.f32.mxu1 %vm1649_vm5, %v238_v15  ;;  %v1119_v59 = vpack.c.bf16 %v697_v57, %v695_v50  ;;  %v1131_v15 = vpack.c.bf16 %v709_v13, %v707_v12  ;;  %v737_v50 = vld [vmem:[%s1868_s4 + $0x158] sm:$0xff] }
 0x122   :  { %1120 = vmatprep.subr.bf16.mxu0 %v1119_v59  ;;  %v734_v59 = vld [vmem:[%s1868_s4 + $0x140] sm:$0xff] }
 0x123   :  { %867 = vmatmul.mubr.msk.f32.gmra.mrb[18].mxu1 %vm1649_vm5, %v1572_v10  ;;  %1122 = vmatpush1.bf16.msra.mxu0 %v1121_v63  ;;  %v1127_v10 = vpack.c.bf16 %v705_v8, %v703_v5  ;;  %v1161_v63 = vpack.c.bf16 %v736_v60, %v734_v59  ;;  %v1165_v5 = vpack.c.bf16 %v740_v3, %v738_v2 }
 0x124   :  { %627 = vmatprep.mubr.f32.mxu1 %v242_v30  ;;  %1124 = vmatprep.subr.bf16.mxu0 %v1123_v0  ;;  %v716_v30 = vld [vmem:[%s1868_s4 + $0xb0] sm:$0xff]  ;;  %v1163_v0 = vpack.c.bf16 %v741_v62, %v739_v61 }
 0x125   :  { %v1141_v33 = vpack.c.bf16 %v716_v30, %v714_v29 }
 0x127   :  { %628 = vmatmul.mubr.f32.gmra.mrb[20].mxu1 %v240_v24  ;;  %1126 = vmatpush1.bf16.msra.mxu0 %v1125_v9  ;;  %v715_v24 = vld [vmem:[%s1868_s4 + $0xa8] sm:$0xff] }
 0x128   :  { %868 = vmatprep.mubr.msk.f32.mxu1 %vm1660_vm6, %v252_v56  ;;  %1128 = vmatprep.subr.bf16.mxu0 %v1127_v10  ;;  %v1139_v28 = vpack.c.bf16 %v717_v26, %v715_v24  ;;  %v732_v56 = vld [vmem:[%s1868_s4 + $0x130] sm:$0xff] }
 0x129   :  { %v1157_v57 = vpack.c.bf16 %v732_v56, %v730_v54 }
 0x12b   :  { %869 = vmatmul.mubr.msk.f32.gmra.mrb[22].mxu1 %vm1660_vm6, %v251_v1  ;;  %1130 = vmatpush1.bf16.msra.mxu0 %v1129_v14  ;;  %v735_v1 = vld [vmem:[%s1868_s4 + $0x148] sm:$0xff]  ;;  %s1186_s4 = smov 64  }
 0x12c   :  { %1132 = vmatprep.subr.bf16.mxu0 %v1131_v15  ;;  %v1159_v58 = vpack.c.bf16 %v737_v50, %v735_v1 }
 0x12f   :  { %1134 = vmatpush1.bf16.msra.mxu0 %v1133_v20 }
 0x130   :  { %1136 = vmatprep.subr.bf16.mxu0 %v1135_v21 }
 0x133   :  { %1138 = vmatpush1.bf16.msra.mxu0 %v1137_v27 }
 0x134   :  { %1140 = vmatprep.subr.bf16.mxu0 %v1139_v28 }
 0x137   :  { %1142 = vmatpush1.bf16.msra.mxu0 %v1141_v33 }
 0x138   :  { %1144 = vmatprep.subr.bf16.mxu0 %v1143_v7 }
 0x13b   :  { %1146 = vmatpush1.bf16.msra.mxu0 %v1145_v38 }
 0x13c   :  { %1148 = vmatprep.subr.bf16.mxu0 %v1147_v39 }
 0x13f   :  { %1150 = vmatpush1.bf16.msra.mxu0 %v1149_v44 }
 0x140   :  { %1152 = vmatprep.subr.bf16.mxu0 %v1151_v45 }
 0x143   :  { %1154 = vmatpush1.bf16.msra.mxu0 %v1153_v51 }
 0x144   :  { %1156 = vmatprep.subr.bf16.mxu0 %v1155_v53 }
 0x147   :  { %1158 = vmatpush1.bf16.msra.mxu0 %v1157_v57 }
 0x148   :  { %1160 = vmatprep.subr.bf16.mxu0 %v1159_v58 }
 0x14b   :  { %1162 = vmatpush1.bf16.msra.mxu0 %v1161_v63 }
 0x14c   :  { %1164 = vmatprep.subr.bf16.mxu0 %v1163_v0 }
 0x14f   :  { %1166 = vmatpush1.bf16.msra.mxu0 %v1165_v5 }
 0x1cf   :  { %v951_v8 = vpop.f32.mrb[0].mxu0 }
 0x1d0   :  { %v952_v9 = vpop.f32.mrb[1].mxu0 }
 0x1d1   :  { %v953_v10 = vadd.f32 %v952_v9, %v951_v8 }
 0x1d2   :  { %v907_v11 = vpop.f32.mrb[8].mxu1 }
 0x1d3   :  { %v908_v12 = vpop.f32.mrb[9].mxu1  ;;  %v954_v13 = vpop.f32.mrb[2].mxu0 }
 0x1d4   :  { %v909_v14 = vadd.f32 %v908_v12, %v907_v11  ;;  %v955_v15 = vpop.f32.mrb[3].mxu0 }
 0x1d5   :  { %v956_v16 = vadd.f32 %v955_v15, %v954_v13 }
 0x1d6   :  { %v450_v17 = vadd.f32 %v909_v14, %v382_v6  ;;  %v910_v18 = vpop.f32.mrb[10].mxu1 }
 0x1d7   :  { %v911_v19 = vpop.f32.mrb[11].mxu1  ;;  %v957_v20 = vpop.f32.mrb[4].mxu0 }
 0x1d8   :  { %v912_v21 = vadd.f32 %v911_v19, %v910_v18  ;;  %v958_v22 = vpop.f32.mrb[5].mxu0  ;;  %v535_v23 = vadd.f32 %v953_v10, %v450_v17 }
 0x1d9   :  { %v959_v24 = vadd.f32 %v958_v22, %v957_v20 }
 0x1da   :  { %v455_v26 = vadd.f32 %v912_v21, %v382_v6  ;;  %v913_v27 = vpop.f32.mrb[12].mxu1 }
 0x1db   :  { %v914_v28 = vpop.f32.mrb[13].mxu1  ;;  %v960_v29 = vpop.f32.mrb[6].mxu0 }
 0x1dc   :  { %v540_v30 = vadd.f32 %v956_v16, %v455_v26  ;;  %v915_v31 = vadd.f32 %v914_v28, %v913_v27  ;;  %v961_v32 = vpop.f32.mrb[7].mxu0  ;;  %v743_v27 = vstv %s870_s29 }
 0x1dd   :  { %v962_v33 = vadd.f32 %v961_v32, %v960_v29 }
 0x1de   :  { %v460_v7 = vadd.f32 %v915_v31, %v382_v6  ;;  %v916_v34 = vpop.f32.mrb[14].mxu1 }
 0x1df   :  { %v917_v35 = vpop.f32.mrb[15].mxu1 }
 0x1e0   :  { %v545_v36 = vadd.f32 %v959_v24, %v460_v7  ;;  %v918_v37 = vadd.f32 %v917_v35, %v916_v34 }
 0x1e2   :  { %v465_v38 = vadd.f32 %v918_v37, %v382_v6 }
 0x1e4   :  { %v550_v39 = vadd.f32 %v962_v33, %v465_v38 }
 0x1f2   :  { %v995_v40 = vpop.f32.mrb[16].mxu1 }
 0x1f3   :  { %v996_v41 = vpop.f32.mrb[17].mxu1 }
 0x1f4   :  { %v997_v42 = vadd.f32 %v996_v41, %v995_v40 }
 0x1f6   :  { %v620_v43 = vadd.f32 %v997_v42, %v535_v23  ;;  %v998_v44 = vpop.f32.mrb[18].mxu1 }
 0x1f7   :  { %v999_v45 = vpop.f32.mrb[19].mxu1 }
 0x1f8   :  { %v638_v46 = vmax.f32 %v620_v43, 0.0  ;;  %v1000_v47 = vadd.f32 %v999_v45, %v998_v44 }
 0x1fa   :  { %v625_v48 = vadd.f32 %v1000_v47, %v540_v30  ;;  %678 = vrot.lane.b32.xlu0 %v638_v46, %s1186_s4  ;;  %v1001_v49 = vpop.f32.mrb[20].mxu1  ;;  %v658_v56 = vrot.slane %v638_v46, 1  ;;  %v646_v59 = vrot.slane %v638_v46, 7 }
 0x1fb   :  { %v1002_v51 = vpop.f32.mrb[21].mxu1 }
 0x1fc   :  { %v639_v53 = vmax.f32 %v625_v48, 0.0  ;;  %v1003_v54 = vadd.f32 %v1002_v51, %v1001_v49  ;;  %v657_v14 = vsel %vm203_vm1, 0.0, %v646_v59 }
 0x1fd   :  { %v670_v16 = vsel %vm1520_vm2, %v657_v14, 0.0 }
 0x1fe   :  { %v647_v1 = vrot.slane %v639_v53, 7  ;;  %v659_v50 = vrot.slane %v639_v53, 1  ;;  %v630_v57 = vadd.f32 %v1003_v54, %v545_v36  ;;  %v1004_v58 = vpop.f32.mrb[22].mxu1  ;;  %680 = vrot.lane.b32.xlu0 %v639_v53, %s1186_s4 }
 0x1ff   :  { %v1005_v60 = vpop.f32.mrb[23].mxu1 }
 0x200   :  { %v640_v61 = vmax.f32 %v630_v57, 0.0  ;;  %v1006_v62 = vadd.f32 %v1005_v60, %v1004_v58  ;;  %v660_v63 = vsel %vm228_vm3, %v658_v56, %v659_v50  ;;  %v648_v0 = vsel %vm203_vm1, %v646_v59, %v647_v1 }
 0x201   :  { %871 = vmatprep.mubr.msk.f32.mxu0 %vm85_vm0, %v660_v63 }
 0x202   :  { %v649_v2 = vrot.slane %v640_v61, 7  ;;  %v661_v3 = vrot.slane %v640_v61, 1  ;;  %v635_v5 = vadd.f32 %v1006_v62, %v550_v39  ;;  %682 = vrot.lane.b32.xlu1 %v640_v61, %s1186_s4 }
 0x204   :  { %v641_v8 = vmax.f32 %v635_v5, 0.0  ;;  %v662_v9 = vsel %vm228_vm3, %v659_v50, %v661_v3  ;;  %v650_v10 = vsel %vm203_vm1, %v647_v1, %v649_v2 }
 0x205   :  { %v675_v18 = vsel %vm1649_vm5, %v662_v9, 0.0  ;;  %v672_v25 = vsel %vm1564_vm4, %v650_v10, 0.0 }
 0x206   :  { %v651_v11 = vrot.slane %v641_v8, 7  ;;  %v663_v6 = vrot.slane %v641_v8, 1  ;;  %684 = vrot.lane.b32.xlu1 %v641_v8, %s1186_s4 }
 0x208   :  { %v664_v12 = vsel %vm228_vm3, %v661_v3, %v663_v6  ;;  %v652_v13 = vsel %vm203_vm1, %v649_v2, %v651_v11  ;;  %v669_v21 = vsel %vm228_vm3, %v663_v6, 0.0 }
 0x209   :  { %v677_v52 = vsel %vm1660_vm6, %v669_v21, 0.0 }
 0x26c   :  { %v679_v15 = vpop.permute.xlu0 %678 }
 0x26d   :  { %v690_v17 = vsel %vm85_vm0, %v670_v16, %v679_v15 }
 0x26e   :  { %821 = vmatmul.mubr.f32.vlgmr.msra.gmra.mrb[8].mxu0 %v690_v17 }
 0x26f   :  { %872 = vmatprep.mubr.msk.f32.mxu0 %vm85_vm0, %v675_v18 }
 0x270   :  { %v681_v19 = vpop.permute.xlu0 %680 }
 0x271   :  { %v691_v20 = vsel %vm85_vm0, %v648_v0, %v681_v19 }
 0x272   :  { %827 = vmatmul.mubr.f32.gmra.mrb[10].mxu0 %v691_v20 }
 0x273   :  { %873 = vmatprep.mubr.msk.f32.mxu0 %vm85_vm0, %v664_v12 }
 0x274   :  { %v683_v22 = vpop.permute.xlu1 %682 }
 0x275   :  { %v692_v23 = vsel %vm85_vm0, %v672_v25, %v683_v22 }
 0x276   :  { %833 = vmatmul.mubr.f32.gmra.mrb[12].mxu0 %v692_v23 }
 0x277   :  { %874 = vmatprep.mubr.msk.f32.mxu0 %vm85_vm0, %v677_v52 }
 0x278   :  { %v685_v24 = vpop.permute.xlu1 %684 }
 0x279   :  { %v693_v26 = vsel %vm85_vm0, %v652_v13, %v685_v24 }
 0x27a   :  { %839 = vmatmul.mubr.f32.gmra.mrb[14].mxu0 %v693_v26 }
 0x341   :  { %v822_v28 = vpop.f32.mrb[8].mxu0 }
 0x342   :  { %v823_v29 = vadd.f32 %v822_v28, %v743_v27  ;;  %v824_v30 = vpop.f32.mrb[9].mxu0 }
 0x343   :  { %v825_v31 = vadd.f32 %v824_v30, %v743_v27 }
 0x344   :  { %845 = vst [vmem:[%s1870_s6] sm:$0xff] %v823_v29 }
 0x345   :  { %846 = vst [vmem:[%s1870_s6 + $0x8] sm:$0xff] %v825_v31  ;;  %v828_v4 = vpop.f32.mrb[10].mxu0 }
 0x346   :  { %v829_v55 = vadd.f32 %v828_v4, %v743_v27  ;;  %v830_v32 = vpop.f32.mrb[11].mxu0 }
 0x347   :  { %v831_v33 = vadd.f32 %v830_v32, %v743_v27 }
 0x348   :  { %847 = vst [vmem:[%s1870_s6 + $0x10] sm:$0xff] %v829_v55 }
 0x349   :  { %848 = vst [vmem:[%s1870_s6 + $0x18] sm:$0xff] %v831_v33  ;;  %v834_v7 = vpop.f32.mrb[12].mxu0 }
 0x34a   :  { %v835_v34 = vadd.f32 %v834_v7, %v743_v27  ;;  %v836_v35 = vpop.f32.mrb[13].mxu0 }
 0x34b   :  { %v837_v36 = vadd.f32 %v836_v35, %v743_v27 }
 0x34c   :  { %849 = vst [vmem:[%s1870_s6 + $0x20] sm:$0xff] %v835_v34 }
 0x34d   :  { %850 = vst [vmem:[%s1870_s6 + $0x28] sm:$0xff] %v837_v36  ;;  %v840_v37 = vpop.f32.mrb[14].mxu0 }
 0x34e   :  { %v841_v38 = vadd.f32 %v840_v37, %v743_v27  ;;  %v842_v39 = vpop.f32.mrb[15].mxu0 }
 0x34f   :  { %v843_v40 = vadd.f32 %v842_v39, %v743_v27 }
 0x350   :  { %851 = vst [vmem:[%s1870_s6 + $0x30] sm:$0xff] %v841_v38 }
 0x351   :  { %852 = vst [vmem:[%s1870_s6 + $0x38] sm:$0xff] %v843_v40 }
 0x352   :  { %857 = vsyncpa [#allocation3], 1 }

</bundles_post_ra>
